<compile_context>
chip_gen: v5e
topology: v5e:2x2
jax: 0.10.0
libtpu: 0.0.40
codegen_flags: <defaults>
</compile_context>

<pallas_src>
import jax
import jax.numpy as jnp
from jax import lax
from jax.experimental import pallas as pl
from jax.experimental.pallas import tpu as pltpu


_ACC_W = 512        # lane width of the streaming accumulators (multiple of 128)
_MAX_CHUNKS = 16    # cap on the unrolled per-tile chunk loop


def _default_target_block_bytes():
    """Generation-aware per-block byte budget for the streamed input."""
    try:
        info = pltpu.get_tpu_info()
        vmem = int(getattr(info, "vmem_capacity_bytes", 128 << 20))
    except Exception:
        vmem = 128 << 20
    # v7x: 64 MiB VMEM but ~3.2 TB/s HBM -> bigger blocks amortise per-step
    # overhead.  v5e/v6e (128 MiB VMEM): 4 MiB is already <1% step overhead.
    return (8 << 20) if vmem <= (64 << 20) else (4 << 20)


def _make_stream_kernel(C, HW, hw_tile, n_chunks, need_mask):
    inv_hw = 1.0 / float(HW)

    def kernel(x_ref, w1_ref, w2_ref, o_ref, sum_acc, max_acc, pooled):
        # x_ref : (1, C, hw_tile)     one batch element, all channels, one HW tile
        # w1_ref: (C, hidden)         f1 weight, pre-transposed
        # w2_ref: (hidden, C)         f2 weight, pre-transposed
        # o_ref : (1, 1, C)           attention weights for this batch element
        # sum_acc/max_acc: (1, C, _ACC_W) lane-shaped running sum / running max
        # pooled: (2, C)              [avg; max] built once in the epilogue
        hw_idx = pl.program_id(1)
        n_hw = pl.num_programs(1)

        @pl.when(hw_idx == 0)
        def _init():
            sum_acc[...] = jnp.zeros_like(sum_acc)
            max_acc[...] = jnp.full_like(max_acc, -jnp.inf)

        def accumulate(masked):
            # Fold the (1, C, hw_tile) tile into the lane-shaped accumulators
            # chunk by chunk: pure VPU adds/maxes, no cross-lane reduce here.
            for i in range(n_chunks):
                off = i * _ACC_W
                chunk = x_ref[:, :, pl.ds(off, _ACC_W)].astype(jnp.float32)
                if masked:
                    lane = lax.broadcasted_iota(jnp.int32, chunk.shape, 2)
                    valid = (hw_idx * hw_tile + off + lane) < HW
                    sum_acc[...] += jnp.where(valid, chunk, 0.0)
                    max_acc[...] = jnp.maximum(
                        max_acc[...], jnp.where(valid, chunk, -jnp.inf))
                else:
                    sum_acc[...] += chunk
                    max_acc[...] = jnp.maximum(max_acc[...], chunk)

        if need_mask:
            # Mask only the final HW tile; keep the steady state unmasked.
            @pl.when(hw_idx < n_hw - 1)
            def _fast():
                accumulate(False)

            @pl.when(hw_idx == n_hw - 1)
            def _edge():
                accumulate(True)
        else:
            accumulate(False)

        @pl.when(hw_idx == n_hw - 1)
        def _finalize():
            # Single cross-lane reduce + relayout per batch element.
            pooled[0:1, :] = jnp.sum(sum_acc[...], axis=-1) * inv_hw   # avg (1, C)
            pooled[1:2, :] = jnp.max(max_acc[...], axis=-1)            # max (1, C)
            p = pooled[...]                                            # (2, C)
            h = jnp.maximum(
                jnp.dot(p, w1_ref[...], preferred_element_type=jnp.float32), 0.0)
            y = jnp.dot(h, w2_ref[...], preferred_element_type=jnp.float32)
            out = y[0:1, :] + y[1:2, :]                                # (1, C)
            o_ref[...] = jax.nn.sigmoid(out).reshape(o_ref.shape).astype(o_ref.dtype)

    return kernel


def _make_small_kernel(TB, HW):
    inv_hw = 1.0 / float(HW)

    def kernel(x_ref, w1_ref, w2_ref, o_ref):
        # x_ref: (TB, C, HW), o_ref: (TB, 1, C)
        x = x_ref[...].astype(jnp.float32)
        avg = jnp.sum(x, axis=-1) * inv_hw                     # (TB, C)
        mx = jnp.max(x, axis=-1)                               # (TB, C)
        p = jnp.concatenate([avg, mx], axis=0)                 # (2*TB, C)
        h = jnp.maximum(
            jnp.dot(p, w1_ref[...], preferred_element_type=jnp.float32), 0.0)
        y = jnp.dot(h, w2_ref[...], preferred_element_type=jnp.float32)
        out = y[:TB, :] + y[TB:, :]                            # (TB, C)
        o_ref[...] = jax.nn.sigmoid(out).reshape(o_ref.shape).astype(o_ref.dtype)

    return kernel


def channel_attention(x, w1, w2, *, target_block_bytes=None):
    """CBAM channel attention.  x: (B, C, H, W); w1: (hidden, C); w2: (C, hidden).

    Returns sigmoid(f2(relu(f1(avg_pool(x)))) + f2(relu(f1(max_pool(x))))) with
    shape (B, C, 1, 1) in x.dtype.
    """
    B, C, H, W = x.shape
    hidden = w1.shape[0]
    HW = H * W
    x_flat = x.reshape(B, C, HW)
    itemsize = jnp.dtype(x.dtype).itemsize

    # Pre-transpose the 1x1-conv weights once (no in-kernel .T).
    w1t = jnp.asarray(w1, jnp.float32).T          # (C, hidden)
    w2t = jnp.asarray(w2, jnp.float32).T          # (hidden, C)
    w_bytes = 2 * (w1t.size * 4 + w2t.size * 4)   # double-buffered weight residents

    if target_block_bytes is None:
        target_block_bytes = _default_target_block_bytes()

    if C * HW * itemsize <= target_block_bytes:
        # ---- Small-HW path: batch several images per grid step. ----
        per_elem = C * HW * itemsize
        TB = 1
        for t in range(1, B + 1):
            if B % t == 0 and t * per_elem <= target_block_bytes:
                TB = t
        kernel = _make_small_kernel(TB, HW)
        block_bytes = TB * per_elem
        # Budget: double-buffered input + f32 copy + pooled/MLP temporaries.
        vmem_limit = int(min(max(
            2 * block_bytes + 3 * TB * C * HW * 4 + w_bytes + (2 << 20),
            4 << 20), 48 << 20))
        grid_spec = pltpu.PrefetchScalarGridSpec(
            num_scalar_prefetch=0,
            grid=(B // TB,),
            in_specs=[
                pl.BlockSpec((TB, C, HW), lambda b: (b, 0, 0)),
                pl.BlockSpec((C, hidden), lambda b: (0, 0)),
                pl.BlockSpec((hidden, C), lambda b: (0, 0)),
            ],
            out_specs=pl.BlockSpec((TB, 1, C), lambda b: (b, 0, 0)),
        )
        dim_sem = ("parallel",)
    else:
        # ---- Streaming path: grid (B, HW tiles), accumulate in VMEM scratch. ----
        lanes_budget = max(_ACC_W, target_block_bytes // max(1, C * itemsize))
        n_chunks = int(max(1, min(_MAX_CHUNKS,
                                  lanes_budget // _ACC_W,
                                  pl.cdiv(HW, _ACC_W))))
        hw_tile = n_chunks * _ACC_W
        n_hw = pl.cdiv(HW, hw_tile)
        need_mask = (HW % hw_tile) != 0
        kernel = _make_stream_kernel(C, HW, hw_tile, n_chunks, need_mask)
        block_bytes = C * hw_tile * itemsize
        acc_bytes = 2 * C * _ACC_W * 4
        tmp_bytes = 3 * C * _ACC_W * 4        # per-chunk f32 cast + mask temporaries
        vmem_limit = int(min(max(
            2 * block_bytes + acc_bytes + tmp_bytes + w_bytes + (2 << 20),
            4 << 20), 48 << 20))
        grid_spec = pltpu.PrefetchScalarGridSpec(
            num_scalar_prefetch=0,
            grid=(B, n_hw),
            in_specs=[
                pl.BlockSpec((1, C, hw_tile), lambda b, h: (b, 0, h)),
                pl.BlockSpec((C, hidden), lambda b, h: (0, 0)),
                pl.BlockSpec((hidden, C), lambda b, h: (0, 0)),
            ],
            out_specs=pl.BlockSpec((1, 1, C), lambda b, h: (b, 0, 0)),
            scratch_shapes=[
                pltpu.VMEM((1, C, _ACC_W), jnp.float32),   # running sum (lane-shaped)
                pltpu.VMEM((1, C, _ACC_W), jnp.float32),   # running max (lane-shaped)
                pltpu.VMEM((2, C), jnp.float32),           # pooled [avg; max]
            ],
        )
        # NOTE: with B == 1 on v7x (2 TCs) only one core gets work; splitting the
        # HW axis across cores would require a CMEM combine pass, not done here.
        dim_sem = ("parallel", "arbitrary")

    cost = pl.CostEstimate(
        flops=2 * B * C * HW + 8 * B * C * hidden,
        transcendentals=B * C,
        bytes_accessed=int(x_flat.size * itemsize + w1t.size * 4 + w2t.size * 4
                           + B * C * itemsize),
    )

    out = pl.pallas_call(
        kernel,
        out_shape=jax.ShapeDtypeStruct((B, 1, C), x.dtype),
        grid_spec=grid_spec,
        compiler_params=pltpu.CompilerParams(
            dimension_semantics=dim_sem,
            vmem_limit_bytes=vmem_limit,
        ),
        cost_estimate=cost,
    )(x_flat, w1t, w2t)

    return out.reshape(B, C, 1, 1)


def reference(x, w1, w2):
    xf = x.astype(jnp.float32)
    avg = jnp.mean(xf, axis=(2, 3))
    mx = jnp.max(xf, axis=(2, 3))

    def mlp(p):
        return jnp.maximum(p @ w1.T, 0.0) @ w2.T

    out = jax.nn.sigmoid(mlp(avg) + mlp(mx))
    return out.reshape(x.shape[0], x.shape[1], 1, 1).astype(x.dtype)


if __name__ == "__main__":
    key = jax.random.PRNGKey(0)
    kx1, kx2, kx3, kx4, k1, k2 = jax.random.split(key, 6)

    B, C, ratio = 2, 64, 16
    hidden = C // ratio  # 4

    # Conv2d(C, hidden, 1, bias=False).weight -> (hidden, C)
    w1 = jax.random.normal(k1, (hidden, C), dtype=jnp.float32) * 0.1
    # Conv2d(hidden, C, 1, bias=False).weight -> (C, hidden)
    w2 = jax.random.normal(k2, (C, hidden), dtype=jnp.float32) * 0.1

    def check(x, **kw):
        out = jax.block_until_ready(channel_attention(x, w1, w2, **kw))
        ref = reference(x, w1, w2)
        assert out.shape == (x.shape[0], C, 1, 1)
        assert jnp.allclose(out, ref, atol=1e-5, rtol=1e-5), \
            float(jnp.max(jnp.abs(out - ref)))

    # 1) Small-HW fused path (TB=2 batch elements per grid step).
    check(jax.random.normal(kx1, (B, C, 16, 16), dtype=jnp.float32))

    # 2) Streaming path, HW a multiple of the tile (no masking, 2 tiles).
    check(jax.random.normal(kx2, (B, C, 32, 32), dtype=jnp.float32),
          target_block_bytes=128 * 1024)

    # 3) Streaming path with a partial last tile (mask only on the final tile).
    check(jax.random.normal(kx3, (B, C, 40, 40), dtype=jnp.float32),
          target_block_bytes=128 * 1024)

    # 4) Edge case: 128 < HW < hw_tile (single padded tile, masked tail lanes).
    check(jax.random.normal(kx4, (B, C, 15, 20), dtype=jnp.float32),
          target_block_bytes=64 * 1024)

    print("KERNEL_OK")
</pallas_src>

<mosaic_0001>
module attributes {stable_mosaic.version = 11 : i64} {
  func.func @kernel(%arg0: i32, %arg1: memref<2x64x256xf32, #tpu.memory_space<vmem>>, %arg2: memref<64x4xf32, #tpu.memory_space<vmem>>, %arg3: memref<4x64xf32, #tpu.memory_space<vmem>>, %arg4: memref<2x1x64xf32, #tpu.memory_space<vmem>>) attributes {dimension_semantics = [#tpu.dimension_semantics<parallel>], iteration_bounds = array<i64: 1>, scalar_prefetch = 0 : i64, scratch_operands = 0 : i64, tpu.core_type = #tpu.core_type<tc>, window_params = [{transform_indices = @transform_0, window_bounds = array<i64: 2, 64, 256>}, {pipeline_mode = #tpu.pipeline_mode<synchronous>, transform_indices = @transform_1, window_bounds = array<i64: 64, 4>}, {pipeline_mode = #tpu.pipeline_mode<synchronous>, transform_indices = @transform_2, window_bounds = array<i64: 4, 64>}, {transform_indices = @transform_3, window_bounds = array<i64: 2, 1, 64>}]} {
    %c0 = arith.constant 0 : index
    %c0_0 = arith.constant 0 : index
    %c0_1 = arith.constant 0 : index
    %0 = vector.load %arg1[%c0, %c0_0, %c0_1] : memref<2x64x256xf32, #tpu.memory_space<vmem>>, vector<2x64x256xf32>
    %cst = arith.constant dense<0.000000e+00> : vector<2x64xf32>
    %1 = vector.multi_reduction <add>, %0, %cst [2] : vector<2x64x256xf32> to vector<2x64xf32>
    %cst_2 = arith.constant 3.906250e-03 : f32
    %2 = vector.broadcast %cst_2 : f32 to vector<2x64xf32>
    %3 = arith.mulf %1, %2 : vector<2x64xf32>
    %cst_3 = arith.constant dense<0xFF800000> : vector<2x64xf32>
    %4 = vector.multi_reduction <maximumf>, %0, %cst_3 [2] : vector<2x64x256xf32> to vector<2x64xf32>
    %5 = tpu.concatenate %3, %4 in 0 : vector<2x64xf32>, vector<2x64xf32> -> vector<4x64xf32>
    %c0_4 = arith.constant 0 : index
    %c0_5 = arith.constant 0 : index
    %6 = vector.load %arg2[%c0_4, %c0_5] : memref<64x4xf32, #tpu.memory_space<vmem>>, vector<64x4xf32>
    %cst_6 = arith.constant dense<0.000000e+00> : vector<4x4xf32>
    %7 = tpu.matmul %5, %6, %cst_6 {dimension_numbers = #tpu.dot_dimension_numbers<[1], [0], [0], [1], [0, 0, 1, 1], [], []>} : vector<4x64xf32>, vector<64x4xf32>, vector<4x4xf32> -> vector<4x4xf32>
    %cst_7 = arith.constant 0.000000e+00 : f32
    %8 = vector.broadcast %cst_7 : f32 to vector<4x4xf32>
    %9 = arith.maximumf %7, %8 : vector<4x4xf32>
    %c0_8 = arith.constant 0 : index
    %c0_9 = arith.constant 0 : index
    %10 = vector.load %arg3[%c0_8, %c0_9] : memref<4x64xf32, #tpu.memory_space<vmem>>, vector<4x64xf32>
    %cst_10 = arith.constant dense<0.000000e+00> : vector<4x64xf32>
    %11 = tpu.matmul %9, %10, %cst_10 {dimension_numbers = #tpu.dot_dimension_numbers<[1], [0], [0], [1], [0, 0, 1, 1], [], []>} : vector<4x4xf32>, vector<4x64xf32>, vector<4x64xf32> -> vector<4x64xf32>
    %12 = vector.extract_strided_slice %11 {offsets = [0, 0], sizes = [2, 64], strides = [1, 1]} : vector<4x64xf32> to vector<2x64xf32>
    %13 = vector.extract_strided_slice %11 {offsets = [2, 0], sizes = [2, 64], strides = [1, 1]} : vector<4x64xf32> to vector<2x64xf32>
    %14 = arith.addf %12, %13 : vector<2x64xf32>
    %15 = arith.negf %14 : vector<2x64xf32>
    %16 = math.exp %15 : vector<2x64xf32>
    %cst_11 = arith.constant 1.000000e+00 : f32
    %17 = vector.broadcast %cst_11 : f32 to vector<2x64xf32>
    %18 = arith.addf %17, %16 : vector<2x64xf32>
    %19 = arith.divf %17, %18 : vector<2x64xf32>
    %20 = vector.shape_cast %19 : vector<2x64xf32> to vector<2x1x64xf32>
    %c0_12 = arith.constant 0 : index
    %c0_13 = arith.constant 0 : index
    %c0_14 = arith.constant 0 : index
    %21 = vector.load %arg4[%c0_12, %c0_13, %c0_14] : memref<2x1x64xf32, #tpu.memory_space<vmem>>, vector<2x1x64xf32>
    tpu.vector_store %arg4[%c0_12, %c0_13, %c0_14], %20 {strides = array<i32>} : memref<2x1x64xf32, #tpu.memory_space<vmem>>, vector<2x1x64xf32>,
    return
  }
  func.func @transform_0(%arg0: i32) -> (i32, i32, i32) {
    %c0_i32 = arith.constant 0 : i32
    %c0_i32_0 = arith.constant 0 : i32
    %c0_i32_1 = arith.constant 0 : i32
    return %arg0, %c0_i32, %c0_i32_0 : i32, i32, i32
  }
  func.func @transform_1(%arg0: i32) -> (i32, i32) {
    %c0_i32 = arith.constant 0 : i32
    %c0_i32_0 = arith.constant 0 : i32
    %c0_i32_1 = arith.constant 0 : i32
    return %c0_i32, %c0_i32_0 : i32, i32
  }
  func.func @transform_2(%arg0: i32) -> (i32, i32) {
    %c0_i32 = arith.constant 0 : i32
    %c0_i32_0 = arith.constant 0 : i32
    %c0_i32_1 = arith.constant 0 : i32
    return %c0_i32, %c0_i32_0 : i32, i32
  }
  func.func @transform_3(%arg0: i32) -> (i32, i32, i32) {
    %c0_i32 = arith.constant 0 : i32
    %c0_i32_0 = arith.constant 0 : i32
    %c0_i32_1 = arith.constant 0 : i32
    return %arg0, %c0_i32, %c0_i32_0 : i32, i32, i32
  }
}

</mosaic_0001>

<bundles_post_ra>
// kernel: tpu_custom_call.1
= control target key start
LH: loop header
LB: loop body
LE: loop exit
PB: predicated region body
PF: predicated region fallthrough
CT: control target
= control target key end

     0   :  { %8 = vsyncpa [#allocation3], 0  ;;  %s643_s0 = inlined_call_operand.hbm [shape: f32[2,64,256], index: 0, kind: input, shape index: {}]   ;;  %s644_s1 = inlined_call_operand.vmem [shape: f32[64,4], index: 1, kind: input, shape index: {}]   ;;  %s645_s2 = inlined_call_operand.vmem [shape: f32[4,64], index: 2, kind: input, shape index: {}]   ;;  %s646_s3 = inlined_call_operand.hbm [shape: f32[2,1,64], index: 3, kind: output, shape index: {}]  }
   0x1   :  { %9 = vsyncpa [#allocation4], 0  ;;  %s14_s14 = sshll.u32 %s643_s0, 4  ;;  %s466_s15 = smov [#allocation2]   ;;  %s15_s14 = int_to_ptr.hbm [resolvable:$true] %s14_s14 }
   0x2   :  { %s16_s16 = sshll.u32 %s466_s15, 4  ;;  %s467_s17 = smov 256   ;;  %s17_s16 = int_to_ptr.vmem [resolvable:$true] %s16_s16 }
   0x3   :  { %s468_s18 = smov 16  }
   0x4   :  { %22 = dma.hbm_to_vmem [thread:$0]  %s15_s14, 4096, %s17_s16, [#allocation3], %s467_s17, %s467_s17, %s468_s18  }
   0x5   :  { %462 = dma.done.wait [#allocation3], 4096  }
   0x6   :  { %463 = vsyncadd [#allocation3], 4294963200  ;;  %v47_v0 = vld [vmem:[#allocation2 + $0x80] sm:$0xff]  ;;  %v48_v1 = vld [vmem:[#allocation2 + $0x88] sm:$0xff]  ;;  %vm196_vm0 = vcmask 130112   ;;  %vm200_vm1 = vcmask 195712  }
   0x7   :  { %v35_v2 = vld [vmem:[#allocation2 + $0x20] sm:$0xff]  ;;  %v87_v3 = vadd.f32 %v48_v1, %v47_v0  ;;  %v36_v4 = vld [vmem:[#allocation2 + $0x28] sm:$0xff]  ;;  %v49_v9 = vld [vmem:[#allocation2 + $0x90] sm:$0xff]  ;;  %v151_v25 = vmax.f32 %v47_v0, %v48_v1  ;;  %v191_v1 = vlaneseq  ;;  %vm204_vm2 = vcmask 261312   ;;  %s388_s11 = sshll.u32 %s646_s3, 4  ;;  %s470_s12 = smov 1   ;;  %s389_s11 = int_to_ptr.hbm [resolvable:$true] %s388_s11 }
   0x8   :  { %v31_v5 = vld [vmem:[#allocation2] sm:$0xff]  ;;  %v32_v6 = vld [vmem:[#allocation2 + $0x8] sm:$0xff]  ;;  %v69_v7 = vadd.f32 %v36_v4, %v35_v2  ;;  %v50_v10 = vld [vmem:[#allocation2 + $0x98] sm:$0xff]  ;;  %v133_v33 = vmax.f32 %v35_v2, %v36_v4  ;;  %vm208_vm3 = vcmask 326912   ;;  %vm212_vm4 = vcmask 392512  }
   0x9   :  { %v63_v8 = vadd.f32 %v32_v6, %v31_v5  ;;  %88 = vadd.xlane.f32.xlu1 %v87_v3  ;;  %v51_v11 = vld [vmem:[#allocation2 + $0xa0] sm:$0xff]  ;;  %v52_v12 = vld [vmem:[#allocation2 + $0xa8] sm:$0xff]  ;;  %v33_v13 = vld [vmem:[#allocation2 + $0x10] sm:$0xff]  ;;  %v90_v15 = vadd.f32 %v50_v10, %v49_v9  ;;  %v127_v23 = vmax.f32 %v31_v5, %v32_v6  ;;  %v154_v26 = vmax.f32 %v49_v9, %v50_v10 }
   0xa   :  { %70 = vadd.xlane.f32.xlu2 %v69_v7  ;;  %v34_v14 = vld [vmem:[#allocation2 + $0x18] sm:$0xff]  ;;  %v93_v16 = vadd.f32 %v52_v12, %v51_v11  ;;  %v53_v18 = vld [vmem:[#allocation2 + $0xb0] sm:$0xff]  ;;  %v55_v28 = vld [vmem:[#allocation2 + $0xc0] sm:$0xff]  ;;  %v157_v41 = vmax.f32 %v51_v11, %v52_v12  ;;  %v495_v4 = vand.u32 127, %v191_v1  ;;  %vm216_vm5 = vcmask 458112  }
   0xb   :  { %64 = vadd.xlane.f32.xlu0 %v63_v8  ;;  %v66_v17 = vadd.f32 %v34_v14, %v33_v13  ;;  %v54_v19 = vld [vmem:[#allocation2 + $0xb8] sm:$0xff]  ;;  %v37_v20 = vld [vmem:[#allocation2 + $0x30] sm:$0xff]  ;;  %v130_v27 = vmax.f32 %v33_v13, %v34_v14  ;;  %v56_v29 = vld [vmem:[#allocation2 + $0xc8] sm:$0xff]  ;;  %vm220_vm6 = vcmask 523712   ;;  %vm237_vm7 = vcmask 1041409  }
   0xc   :  { %v38_v21 = vld [vmem:[#allocation2 + $0x38] sm:$0xff]  ;;  %v96_v22 = vadd.f32 %v54_v19, %v53_v18  ;;  %v39_v30 = vld [vmem:[#allocation2 + $0x40] sm:$0xff]  ;;  %v40_v31 = vld [vmem:[#allocation2 + $0x48] sm:$0xff]  ;;  %v99_v32 = vadd.f32 %v56_v29, %v55_v28  ;;  %v160_v44 = vmax.f32 %v53_v18, %v54_v19  ;;  %v163_v50 = vmax.f32 %v55_v28, %v56_v29 }
   0xd   :  { %v72_v24 = vadd.f32 %v38_v21, %v37_v20  ;;  %v75_v34 = vadd.f32 %v40_v31, %v39_v30  ;;  %v41_v35 = vld [vmem:[#allocation2 + $0x50] sm:$0xff]  ;;  %v42_v36 = vld [vmem:[#allocation2 + $0x58] sm:$0xff]  ;;  %v43_v42 = vld [vmem:[#allocation2 + $0x60] sm:$0xff]  ;;  %v136_v46 = vmax.f32 %v37_v20, %v38_v21  ;;  %v139_v49 = vmax.f32 %v39_v30, %v40_v31 }
   0xe   :  { %v57_v37 = vld [vmem:[#allocation2 + $0xd0] sm:$0xff]  ;;  %v58_v38 = vld [vmem:[#allocation2 + $0xd8] sm:$0xff]  ;;  %v78_v39 = vadd.f32 %v42_v36, %v41_v35  ;;  %v44_v43 = vld [vmem:[#allocation2 + $0x68] sm:$0xff]  ;;  %v142_v57 = vmax.f32 %v41_v35, %v42_v36  ;;  %v498_v6 = vadd.s32 4294967288, %v495_v4  ;;  %v501_v9 = vadd.s32 4294967280, %v495_v4 }
   0xf   :  { %v102_v40 = vadd.f32 %v58_v38, %v57_v37  ;;  %v81_v45 = vadd.f32 %v44_v43, %v43_v42  ;;  %v59_v47 = vld [vmem:[#allocation2 + $0xe0] sm:$0xff]  ;;  %v60_v48 = vld [vmem:[#allocation2 + $0xe8] sm:$0xff]  ;;  %v61_v52 = vld [vmem:[#allocation2 + $0xf0] sm:$0xff]  ;;  %v145_v59 = vmax.f32 %v43_v42, %v44_v43  ;;  %v166_v60 = vmax.f32 %v57_v37, %v58_v38 }
  0x10   :  { %v105_v51 = vadd.f32 %v60_v48, %v59_v47  ;;  %v62_v53 = vld [vmem:[#allocation2 + $0xf8] sm:$0xff]  ;;  %v45_v54 = vld [vmem:[#allocation2 + $0x70] sm:$0xff]  ;;  %v169_v61 = vmax.f32 %v59_v47, %v60_v48  ;;  %v296_v37 = vld [vmem:[%s644_s1 + $0x28] sm:$0xff]  ;;  %v556_v48 = vadd.s32 4294967272, %v495_v4  ;;  %vm286_vm8 = vcmask 1043459  }
  0x11   :  { %91 = vadd.xlane.f32.xlu1 %v90_v15  ;;  %v46_v55 = vld [vmem:[#allocation2 + $0x78] sm:$0xff]  ;;  %v108_v56 = vadd.f32 %v62_v53, %v61_v52  ;;  %v172_v62 = vmax.f32 %v61_v52, %v62_v53  ;;  %v297_v36 = vld [vmem:[%s644_s1 + $0x30] sm:$0xff]  ;;  %v295_v38 = vld [vmem:[%s644_s1 + $0x20] sm:$0xff]  ;;  %v561_v53 = vadd.s32 4294967264, %v495_v4  ;;  %vm289_vm9 = vcmask 1041408  }
  0x12   :  { %94 = vadd.xlane.f32.xlu2 %v93_v16  ;;  %v84_v58 = vadd.f32 %v46_v55, %v45_v54  ;;  %v148_v63 = vmax.f32 %v45_v54, %v46_v55  ;;  %v293_v43 = vld [vmem:[%s644_s1 + $0x10] sm:$0xff]  ;;  %vm299_vm10 = vcmask 523264   ;;  %vm329_vm11 = vcmask 1043456  }
  0x13   :  { %67 = vadd.xlane.f32.xlu0 %v66_v17  ;;  %vm325_vm12 = vcmask 31744  }
  0x19   :  { %97 = vadd.xlane.f32.xlu1 %v96_v22 }
  0x1a   :  { %128 = vmax.xlane.f32.xlu2 %v127_v23 }
  0x1b   :  { %73 = vadd.xlane.f32.xlu0 %v72_v24 }
  0x21   :  { %152 = vmax.xlane.f32.xlu1 %v151_v25 }
  0x22   :  { %155 = vmax.xlane.f32.xlu2 %v154_v26 }
  0x23   :  { %131 = vmax.xlane.f32.xlu0 %v130_v27 }
  0x29   :  { %100 = vadd.xlane.f32.xlu1 %v99_v32  ;;  %v298_v32 = vld [vmem:[%s644_s1 + $0x38] sm:$0xff] }
  0x2a   :  { %134 = vmax.xlane.f32.xlu2 %v133_v33  ;;  %311 = vmatpush.msra.mxu0 %v298_v32 }
  0x2b   :  { %76 = vadd.xlane.f32.xlu0 %v75_v34 }
  0x2c   :  { %312 = vmatpush.msra.mxu0 %v297_v36 }
  0x2e   :  { %313 = vmatpush.msra.mxu0 %v296_v37 }
  0x30   :  { %314 = vmatpush.msra.mxu0 %v295_v38 }
  0x31   :  { %79 = vadd.xlane.f32.xlu1 %v78_v39  ;;  %v294_v39 = vld [vmem:[%s644_s1 + $0x18] sm:$0xff] }
  0x32   :  { %103 = vadd.xlane.f32.xlu2 %v102_v40  ;;  %315 = vmatpush.msra.mxu0 %v294_v39 }
  0x33   :  { %158 = vmax.xlane.f32.xlu0 %v157_v41 }
  0x34   :  { %316 = vmatpush.msra.mxu0 %v293_v43 }
  0x39   :  { %161 = vmax.xlane.f32.xlu1 %v160_v44  ;;  %v292_v44 = vld [vmem:[%s644_s1 + $0x8] sm:$0xff] }
  0x3a   :  { %82 = vadd.xlane.f32.xlu2 %v81_v45  ;;  %317 = vmatpush.msra.mxu0 %v292_v44  ;;  %v291_v45 = vld [vmem:[%s644_s1] sm:$0xff] }
  0x3b   :  { %137 = vmax.xlane.f32.xlu0 %v136_v46 }
  0x3c   :  { %318 = vmatpush.msra.mxu0 %v291_v45 }
  0x41   :  { %140 = vmax.xlane.f32.xlu1 %v139_v49 }
  0x42   :  { %164 = vmax.xlane.f32.xlu2 %v163_v50 }
  0x43   :  { %106 = vadd.xlane.f32.xlu0 %v105_v51 }
  0x49   :  { %109 = vadd.xlane.f32.xlu1 %v108_v56  ;;  %v564_v56 = vadd.s32 4294967256, %v495_v4 }
  0x4a   :  { %143 = vmax.xlane.f32.xlu2 %v142_v57 }
  0x4b   :  { %85 = vadd.xlane.f32.xlu0 %v84_v58 }
  0x51   :  { %146 = vmax.xlane.f32.xlu1 %v145_v59 }
  0x52   :  { %170 = vmax.xlane.f32.xlu2 %v169_v61 }
  0x53   :  { %167 = vmax.xlane.f32.xlu0 %v166_v60 }
  0x59   :  { %173 = vmax.xlane.f32.xlu1 %v172_v62  ;;  %v569_v62 = vadd.s32 4294967248, %v495_v4 }
  0x5b   :  { %149 = vmax.xlane.f32.xlu0 %v148_v63 }
  0x7c   :  { %v89_v0 = vpop.xlane.xlu1 %88 }
  0x7d   :  { %v71_v2 = vpop.xlane.xlu2 %70  ;;  %v119_v5 = vmul.f32 0.00390625, %v89_v0 }
  0x7e   :  { %v65_v3 = vpop.xlane.xlu0 %64  ;;  %v113_v10 = vmul.f32 0.00390625, %v71_v2 }
  0x7f   :  { %v111_v7 = vmul.f32 0.00390625, %v65_v3  ;;  %v222_v15 = vperm.slane %v119_v5, %v495_v4  ;;  %v576_v5 = vadd.s32 4294967240, %v495_v4 }
  0x80   :  { %v199_v19 = vperm.slane %v113_v10, %v501_v9 }
  0x81   :  { %v193_v17 = vperm.slane %v111_v7, %v495_v4 }
  0x84   :  { %v92_v8 = vpop.xlane.xlu1 %91 }
  0x85   :  { %v120_v11 = vmul.f32 0.00390625, %v92_v8  ;;  %v95_v12 = vpop.xlane.xlu2 %94 }
  0x86   :  { %v68_v13 = vpop.xlane.xlu0 %67  ;;  %v121_v46 = vmul.f32 0.00390625, %v95_v12 }
  0x87   :  { %v112_v14 = vmul.f32 0.00390625, %v68_v13  ;;  %v223_v16 = vperm.slane %v120_v11, %v498_v6 }
  0x88   :  { %v225_v58 = vperm.slane %v121_v46, %v501_v9 }
  0x89   :  { %v195_v18 = vperm.slane %v112_v14, %v498_v6  ;;  %v224_v20 = vsel %vm196_vm0, %v223_v16, %v222_v15 }
  0x8a   :  { %v226_v7 = vsel %vm200_vm1, %v225_v58, %v224_v20 }
  0x8b   :  { %v197_v21 = vsel %vm196_vm0, %v195_v18, %v193_v17 }
  0x8c   :  { %v511_v22 = vsel %vm200_vm1, %v199_v19, %v197_v21  ;;  %v98_v23 = vpop.xlane.xlu1 %97 }
  0x8d   :  { %v513_v24 = vpop.xlane.xlu2 %128  ;;  %v122_v49 = vmul.f32 0.00390625, %v98_v23 }
  0x8e   :  { %v74_v25 = vpop.xlane.xlu0 %73  ;;  %v256_v44 = vperm.slane %v513_v24, %v495_v4 }
  0x8f   :  { %v114_v52 = vmul.f32 0.00390625, %v74_v25  ;;  %v227_v61 = vperm.slane %v122_v49, %v556_v48 }
  0x91   :  { %v203_v0 = vperm.slane %v114_v52, %v556_v48  ;;  %v228_v12 = vsel %vm204_vm2, %v227_v61, %v226_v7 }
  0x93   :  { %v205_v17 = vsel %vm204_vm2, %v203_v0, %v511_v22  ;;  %v324_v0 = vld [vmem:[%s645_s2] sm:$0xf]  ;;  %s469_s2 = smov [#allocation5]  }
  0x94   :  { %v515_v26 = vpop.xlane.xlu1 %152  ;;  %402 = vmatpush.msk.msra.mxu1 %vm329_vm11, %v324_v0  ;;  %s386_s8 = sshll.u32 %s469_s2, 4  ;;  %s387_s8 = int_to_ptr.vmem [resolvable:$true] %s386_s8 }
  0x95   :  { %v517_v27 = vpop.xlane.xlu2 %155 }
  0x96   :  { %v519_v28 = vpop.xlane.xlu0 %131  ;;  %v272_v36 = vperm.slane %v517_v27, %v498_v6 }
  0x97   :  { %v257_v45 = vperm.slane %v519_v28, %v498_v6 }
  0x99   :  { %v258_v24 = vsel %vm196_vm0, %v257_v45, %v256_v44 }
  0x9c   :  { %v101_v29 = vpop.xlane.xlu1 %100 }
  0x9d   :  { %v521_v30 = vpop.xlane.xlu2 %134  ;;  %v123_v54 = vmul.f32 0.00390625, %v101_v29 }
  0x9e   :  { %v77_v31 = vpop.xlane.xlu0 %76  ;;  %v259_v46 = vperm.slane %v521_v30, %v501_v9 }
  0x9f   :  { %v115_v55 = vmul.f32 0.00390625, %v77_v31  ;;  %v229_v1 = vperm.slane %v123_v54, %v561_v53 }
  0xa0   :  { %v260_v30 = vsel %vm200_vm1, %v259_v46, %v258_v24 }
  0xa1   :  { %v207_v2 = vperm.slane %v115_v55, %v561_v53  ;;  %v230_v18 = vsel %vm208_vm3, %v229_v1, %v228_v12 }
  0xa3   :  { %v209_v20 = vsel %vm208_vm3, %v207_v2, %v205_v17 }
  0xa4   :  { %v80_v33 = vpop.xlane.xlu1 %79 }
  0xa5   :  { %v104_v34 = vpop.xlane.xlu2 %103  ;;  %v116_v59 = vmul.f32 0.00390625, %v80_v33 }
  0xa6   :  { %v526_v35 = vpop.xlane.xlu0 %158  ;;  %v124_v57 = vmul.f32 0.00390625, %v104_v34  ;;  %v271_v34 = vperm.slane %v515_v26, %v495_v4 }
  0xa7   :  { %v211_v8 = vperm.slane %v116_v59, %v564_v56  ;;  %v274_v38 = vperm.slane %v526_v35, %v501_v9 }
  0xa8   :  { %v231_v3 = vperm.slane %v124_v57, %v564_v56  ;;  %v273_v27 = vsel %vm196_vm0, %v272_v36, %v271_v34  ;;  %vm379_vm0 = vcmask 516096  }
  0xa9   :  { %v213_v25 = vsel %vm212_vm4, %v211_v8, %v209_v20 }
  0xaa   :  { %v232_v21 = vsel %vm212_vm4, %v231_v3, %v230_v18 }
  0xac   :  { %v540_v40 = vpop.xlane.xlu1 %161 }
  0xad   :  { %v83_v41 = vpop.xlane.xlu2 %82 }
  0xae   :  { %v542_v42 = vpop.xlane.xlu0 %137  ;;  %v117_v63 = vmul.f32 0.00390625, %v83_v41  ;;  %v276_v41 = vperm.slane %v540_v40, %v556_v48  ;;  %v275_v40 = vsel %vm200_vm1, %v274_v38, %v273_v27 }
  0xb0   :  { %v215_v13 = vperm.slane %v117_v63, %v569_v62  ;;  %v277_v4 = vsel %vm204_vm2, %v276_v41, %v275_v40 }
  0xb2   :  { %v217_v32 = vsel %vm216_vm5, %v215_v13, %v213_v25 }
  0xb4   :  { %v553_v47 = vpop.xlane.xlu1 %140 }
  0xb5   :  { %v558_v50 = vpop.xlane.xlu2 %164  ;;  %v263_v6 = vperm.slane %v553_v47, %v561_v53 }
  0xb6   :  { %v107_v51 = vpop.xlane.xlu0 %106  ;;  %v278_v26 = vperm.slane %v558_v50, %v561_v53 }
  0xb7   :  { %v125_v60 = vmul.f32 0.00390625, %v107_v51  ;;  %v261_v51 = vperm.slane %v542_v42, %v556_v48 }
  0xb8   :  { %v279_v28 = vsel %vm208_vm3, %v278_v26, %v277_v4 }
  0xb9   :  { %v233_v10 = vperm.slane %v125_v60, %v569_v62  ;;  %v262_v42 = vsel %vm204_vm2, %v261_v51, %v260_v30 }
  0xba   :  { %v264_v55 = vsel %vm208_vm3, %v263_v6, %v262_v42 }
  0xbb   :  { %v234_v29 = vsel %vm216_vm5, %v233_v10, %v232_v21 }
  0xbc   :  { %v110_v11 = vpop.xlane.xlu1 %109 }
  0xbd   :  { %v126_v14 = vmul.f32 0.00390625, %v110_v11  ;;  %v144_v15 = vpop.xlane.xlu2 %143 }
  0xbe   :  { %v86_v16 = vpop.xlane.xlu0 %85  ;;  %v265_v50 = vperm.slane %v144_v15, %v564_v56 }
  0xbf   :  { %v118_v19 = vmul.f32 0.00390625, %v86_v16  ;;  %v235_v23 = vperm.slane %v126_v14, %v576_v5 }
  0xc0   :  { %v266_v57 = vsel %vm212_vm4, %v265_v50, %v264_v55 }
  0xc1   :  { %v219_v31 = vperm.slane %v118_v19, %v576_v5  ;;  %v236_v22 = vsel %vm220_vm6, %v235_v23, %v234_v29 }
  0xc3   :  { %v221_v33 = vsel %vm220_vm6, %v219_v31, %v217_v32 }
  0xc4   :  { %v238_v37 = vsel %vm237_vm7, %v236_v22, %v221_v33  ;;  %v147_v39 = vpop.xlane.xlu1 %146 }
  0xc5   :  { %v171_v49 = vpop.xlane.xlu2 %170  ;;  %v267_v52 = vperm.slane %v147_v39, %v569_v62 }
  0xc6   :  { %v168_v43 = vpop.xlane.xlu0 %167  ;;  %v282_v9 = vperm.slane %v171_v49, %v569_v62 }
  0xc7   :  { %v280_v35 = vperm.slane %v168_v43, %v564_v56  ;;  %v268_v59 = vsel %vm216_vm5, %v267_v52, %v266_v57 }
  0xc9   :  { %v281_v54 = vsel %vm212_vm4, %v280_v35, %v279_v28 }
  0xca   :  { %v283_v56 = vsel %vm216_vm5, %v282_v9, %v281_v54 }
  0xcc   :  { %v174_v48 = vpop.xlane.xlu1 %173 }
  0xcd   :  { %v284_v47 = vperm.slane %v174_v48, %v576_v5 }
  0xce   :  { %v150_v53 = vpop.xlane.xlu0 %149 }
  0xcf   :  { %v269_v58 = vperm.slane %v150_v53, %v576_v5  ;;  %v285_v60 = vsel %vm220_vm6, %v284_v47, %v283_v56 }
  0xd1   :  { %v270_v61 = vsel %vm220_vm6, %v269_v58, %v268_v59 }
  0xd2   :  { %v287_v62 = vsel %vm286_vm8, %v285_v60, %v270_v61 }
  0xd3   :  { %v290_v63 = vsel %vm289_vm9, %v238_v37, %v287_v62 }
  0xd4   :  { %401 = vmatmul.msk.f32.vlgmr.msra.gmra.mxu0 %vm299_vm10, %v290_v63 }
 0x151   :  { %v320_v1 = vpop.f32.mrf.mxu0 }
 0x152   :  { %v323_v2 = vmax.f32 %v320_v1, 0.0 }
 0x154   :  { %403 = vmatmul.msk.f32.vlgmr.msra.gmra.mxu1 %vm325_vm12, %v323_v2 }
 0x1d1   :  { %v350_v3 = vpop.f32.mrf.mxu1 }
 0x1d2   :  { %v354_v5 = vrot.slane %v350_v3, 2 }
 0x1d4   :  { %v356_v7 = vadd.f32 %v354_v5, %v350_v3 }
 0x1d6   :  { %v404_v8 = vmul.f32 -1.442695, %v356_v7 }
 0x1d8   :  { %410 = vpow2.f32 %v404_v8 }
 0x1de   :  { %v411_v10 = vpop.eup %410 }
 0x1df   :  { %v360_v11 = vadd.f32 1.0, %v411_v10 }
 0x1e1   :  { %412 = vrcp.f32 %v360_v11  ;;  %v372_v15 = vand.u32 2147483648, %v360_v11  ;;  %v370_v17 = vand.u32 2147483647, %v360_v11  ;;  %vm366_vm14 = vweird.f32 %v360_v11 }
 0x1e3   :  { %v373_v19 = vor.u32 1.1754944e-38, %v372_v15  ;;  %vm371_vm1 = vcmp.eq.f32.partialorder %v370_v17, 8.507059e+37 }
 0x1e7   :  { %v413_v12 = vpop.eup %412 }
 0x1e8   :  { %v362_v13 = vmul.f32 %v413_v12, %v360_v11  ;;  %vm367_vm13 = vweird.f32 %v413_v12 }
 0x1e9   :  { %vm368_vm15 = vmor %vm366_vm14, %vm367_vm13 }
 0x1ea   :  { %v363_v14 = vsub.f32 1.0, %v362_v13 }
 0x1ec   :  { %v364_v16 = vmul.f32 %v413_v12, %v363_v14 }
 0x1ee   :  { %v365_v18 = vadd.f32 %v413_v12, %v364_v16 }
 0x1f0   :  { %v369_v20 = vsel %vm368_vm15, %v413_v12, %v365_v18 }
 0x1f1   :  { %v374_v21 = vsel %vm371_vm1, %v373_v19, %v369_v20 }
 0x1f2   :  { %v377_v23 = vrot.slane %v374_v21, 1  ;;  %380 = vst.msk [vmem:[#allocation5] sm:$0x1] %vm379_vm0, %v374_v21 }
 0x1f4   :  { %381 = vst.msk [vmem:[#allocation5 + $0x1] sm:$0x1] %vm379_vm0, %v377_v23 }
 0x1f5   :  { %394 = dma.vmem_to_hbm [thread:$0]  %s387_s8, 32, %s389_s11, [#allocation4], %s468_s18, %s468_s18, %s470_s12  }
 0x1f6   :  { %464 = dma.done.wait [#allocation4], 32  }
 0x1f7   :  { %465 = vsyncadd [#allocation4], 4294967264 }
 0x1f8   :  { %399 = vsyncpa [#allocation3], 1 }
 0x1f9   :  { %400 = vsyncpa [#allocation4], 1 }

</bundles_post_ra>
